<compile_context>
chip_gen: v7x
topology: tpu7x:2x2x1
jax: 0.10.0
libtpu: 0.0.40
codegen_flags: <defaults>
</compile_context>

<pallas_src>
import math

import jax
import jax.numpy as jnp
from jax.experimental import pallas as pl
from jax.experimental.pallas import tpu as pltpu


_LANE = 128                  # last-dim vreg granularity
_MIN_PALLAS_BYTES = 4 << 20  # below this, let XLA fuse the add (HBM-bound op)
_SPLIT_MIN_BYTES = 1 << 20   # above this, force >= 2 grid steps (v7x 2-TC sharding)


def _add_pe_kernel(x_ref, pe_ref, o_ref):
    # x_ref : (tile_rows, tile_lanes)  rows = batch, lanes = flattened L*D
    # pe_ref: (1, tile_lanes)          broadcast over rows (sublane broadcast)
    o_ref[...] = x_ref[...] + pe_ref[...]


def _sublane(dtype) -> int:
    """Sublane packing unit: 8 for 4-byte, 16 for 2-byte, 32 for 1-byte dtypes."""
    return max(8, 32 // jnp.dtype(dtype).itemsize)


def _pick_tile(extent: int, unit: int, target: int) -> int:
    """Largest multiple-of-`unit` tile <= target (ragged last block is masked).

    The full extent (always a legal block dim: it equals the array dim) is used
    only when it already fits the target budget, or when extent < unit.
    """
    if extent <= unit or extent <= target:
        return extent
    return max(unit, (min(target, extent) // unit) * unit)


def _hw_budgets():
    """(target_block_bytes, vmem_limit_bytes), generation-aware.

    128 MiB-VMEM parts (v5e/v6e): 4 MiB blocks, 64 MiB scoped limit.
    64 MiB-VMEM parts (v7x):      2 MiB blocks, 32 MiB scoped limit.
    Conservative (v7x-safe) fallback if the trace-time query is unavailable.
    """
    target, limit = 2 << 20, 32 << 20
    try:
        vmem = int(pltpu.get_tpu_info().vmem_capacity_bytes)
        if vmem >= 96 << 20:
            target, limit = 4 << 20, 64 << 20
    except Exception:
        pass
    return target, limit


def make_positional_encoding(length: int, d_model: int = 20, dtype=jnp.float32):
    """Same math as the PyTorch __init__ (sin on even cols, cos on odd cols)."""
    position = jnp.arange(0, length, dtype=jnp.float32)[:, None]              # (L, 1)
    div_term = jnp.exp(
        jnp.arange(0, d_model, 2, dtype=jnp.float32) * (-math.log(10000.0) / d_model)
    )                                                                          # (ceil(D/2),)
    angles = position * div_term                                               # (L, ceil(D/2))
    pe = jnp.zeros((length, d_model), dtype=jnp.float32)
    pe = pe.at[:, 0::2].set(jnp.sin(angles))
    pe = pe.at[:, 1::2].set(jnp.cos(angles)[:, : d_model // 2])
    return pe.astype(dtype)


def positional_encoding_forward(
    x, pe, *, force_pallas: bool = False, donate_x: bool = False, buffer_count=None
):
    """x: (B, L, D), pe: (L, D).  Returns x + pe broadcast over batch."""
    B, L, D = x.shape
    assert pe.shape == (L, D), (pe.shape, (L, D))
    pe = pe.astype(x.dtype)                      # single cast in the wrapper, not per block

    itemsize = x.dtype.itemsize
    nbytes = x.size * itemsize
    if not force_pallas and nbytes < _MIN_PALLAS_BYTES:
        # Standalone broadcast-add is HBM-roofline bound; for small tensors (or
        # whenever XLA can fuse this into a producer/consumer) plain XLA wins.
        return x + pe[None]

    target_bytes, vmem_limit = _hw_budgets()
    sub = _sublane(x.dtype)

    # Lane-dense layout: flatten (L, D) into a single trailing axis.
    LD = L * D
    x2 = x.reshape(B, LD)
    pe2 = pe.reshape(1, LD)

    # Rows (batch) first, then lanes sized from the per-block VMEM budget.
    rows_cap = max(sub, (target_bytes // (_LANE * itemsize)) // sub * sub)
    tile_rows = _pick_tile(B, sub, rows_cap)
    lane_budget = max(_LANE, target_bytes // (tile_rows * itemsize))
    tile_lanes = _pick_tile(LD, _LANE, lane_budget)

    grid_l = pl.cdiv(LD, tile_lanes)
    grid_r = pl.cdiv(B, tile_rows)
    if grid_l * grid_r == 1 and nbytes >= _SPLIT_MIN_BYTES and LD >= 2 * _LANE:
        # Guarantee >= 2 steps along the outer "parallel" lane axis so both
        # v7x TensorCores stream; costs only one extra small pe fetch.
        half = ((LD + 1) // 2 + _LANE - 1) // _LANE * _LANE
        tile_lanes = min(tile_lanes, half)
        grid_l = pl.cdiv(LD, tile_lanes)

    x_spec_kwargs = {}
    if buffer_count is not None:
        # Optional: deeper pipelining for the streamed input (sweep 2 vs 3;
        # keep off by default to preserve VMEM headroom on v7x).
        x_spec_kwargs["pipeline_mode"] = pl.Buffered(buffer_count)

    out2 = pl.pallas_call(
        _add_pe_kernel,
        out_shape=jax.ShapeDtypeStruct((B, LD), x.dtype),
        grid_spec=pltpu.PrefetchScalarGridSpec(
            num_scalar_prefetch=0,
            # Lanes outer, rows inner: pe's block index only changes on the
            # outer axis, so pe is DMA'd exactly once per lane tile.
            grid=(grid_l, grid_r),
            in_specs=[
                pl.BlockSpec((tile_rows, tile_lanes), lambda c, r: (r, c), **x_spec_kwargs),
                pl.BlockSpec((1, tile_lanes), lambda c, r: (0, c)),
            ],
            out_specs=pl.BlockSpec((tile_rows, tile_lanes), lambda c, r: (r, c)),
        ),
        compiler_params=pltpu.CompilerParams(
            dimension_semantics=("parallel", "parallel"),
            vmem_limit_bytes=vmem_limit,
        ),
        input_output_aliases=({0: 0} if donate_x else {}),
    )(x2, pe2)
    return out2.reshape(B, L, D)


if __name__ == "__main__":
    key = jax.random.PRNGKey(0)

    # 1) Small shape matching the module defaults (d_model=20), forced Pallas.
    batch, length, d_model = 2, 8, 20
    x = jax.random.normal(key, (batch, length, d_model), dtype=jnp.float32)
    pe = make_positional_encoding(length, d_model, dtype=x.dtype)
    out = jax.block_until_ready(positional_encoding_forward(x, pe, force_pallas=True))
    assert out.shape == (batch, length, d_model)
    assert jnp.allclose(out, x + pe[None], atol=1e-6, rtol=1e-6), "mismatch (small)"

    # 2) Ragged case: B % 8 != 0 and L*D % 128 != 0 -> masked final lane block
    #    (including the broadcast pe block) and >=2-step parallel lane axis.
    b2, l2, d2 = 30, 500, 20                      # L*D = 10000 (not a multiple of 128)
    k1, k2 = jax.random.split(key)
    xl = jax.random.normal(k1, (b2, l2, d2), dtype=jnp.float32)
    pel = make_positional_encoding(l2, d2, dtype=xl.dtype)
    outl = jax.block_until_ready(positional_encoding_forward(xl, pel, force_pallas=True))
    assert jnp.allclose(outl, xl + pel[None], atol=1e-6, rtol=1e-6), "mismatch (ragged)"

    # 3) Small, un-forced -> takes the XLA fallback path; same numerics.
    outs = jax.block_until_ready(positional_encoding_forward(x, pe))
    assert jnp.allclose(outs, x + pe[None], atol=1e-6, rtol=1e-6), "mismatch (fallback)"

    print("KERNEL_OK")
</pallas_src>

<mosaic_0001>
module attributes {stable_mosaic.version = 11 : i64} {
  func.func @_add_pe_kernel(%arg0: i32, %arg1: i32, %arg2: memref<2x160xf32, #tpu.memory_space<vmem>>, %arg3: memref<1x160xf32, #tpu.memory_space<vmem>>, %arg4: memref<2x160xf32, #tpu.memory_space<vmem>>) attributes {dimension_semantics = [#tpu.dimension_semantics<parallel>, #tpu.dimension_semantics<parallel>], iteration_bounds = array<i64: 1, 1>, scalar_prefetch = 0 : i64, scratch_operands = 0 : i64, tpu.core_type = #tpu.core_type<tc>, window_params = [{transform_indices = @transform_0, window_bounds = array<i64: 2, 160>}, {transform_indices = @transform_1, window_bounds = array<i64: 1, 160>}, {transform_indices = @transform_2, window_bounds = array<i64: 2, 160>}]} {
    %c0 = arith.constant 0 : index
    %c0_0 = arith.constant 0 : index
    %0 = vector.load %arg2[%c0, %c0_0] : memref<2x160xf32, #tpu.memory_space<vmem>>, vector<2x160xf32>
    %c0_1 = arith.constant 0 : index
    %c0_2 = arith.constant 0 : index
    %1 = vector.load %arg3[%c0_1, %c0_2] : memref<1x160xf32, #tpu.memory_space<vmem>>, vector<1x160xf32>
    %2 = vector.broadcast %1 : vector<1x160xf32> to vector<2x160xf32>
    %3 = arith.addf %0, %2 : vector<2x160xf32>
    %c0_3 = arith.constant 0 : index
    %c0_4 = arith.constant 0 : index
    %4 = vector.load %arg4[%c0_3, %c0_4] : memref<2x160xf32, #tpu.memory_space<vmem>>, vector<2x160xf32>
    tpu.vector_store %arg4[%c0_3, %c0_4], %3 {strides = array<i32>} : memref<2x160xf32, #tpu.memory_space<vmem>>, vector<2x160xf32>,
    return
  }
  func.func @transform_0(%arg0: i32, %arg1: i32) -> (i32, i32) {
    %c0_i32 = arith.constant 0 : i32
    return %arg1, %arg0 : i32, i32
  }
  func.func @transform_1(%arg0: i32, %arg1: i32) -> (i32, i32) {
    %c0_i32 = arith.constant 0 : i32
    %c0_i32_0 = arith.constant 0 : i32
    return %c0_i32, %arg0 : i32, i32
  }
  func.func @transform_2(%arg0: i32, %arg1: i32) -> (i32, i32) {
    %c0_i32 = arith.constant 0 : i32
    return %arg1, %arg0 : i32, i32
  }
}

</mosaic_0001>

<bundles_post_ra>
// kernel: tpu_custom_call.1
= control target key start
LH: loop header
LB: loop body
LE: loop exit
PB: predicated region body
PF: predicated region fallthrough
CT: control target
= control target key end

     0   :  { %7 = vsyncpa [#allocation3], 0  ;;  %s160_s0 = inlined_call_operand.hbm [shape: f32[2,160], index: 0, kind: input, shape index: {}]   ;;  %s161_s1 = inlined_call_operand.vmem [shape: f32[1,160], index: 1, kind: input, shape index: {}]   ;;  %s162_s2 = inlined_call_operand.hbm [shape: f32[2,160], index: 2, kind: output, shape index: {}]  }
   0x1   :  { %8 = vsyncpa [#allocation4], 0  ;;  %s115_s9 = smov [#allocation2]   ;;  %s67_s13 = scalar_lea.hbm %s160_s0, 64 }
   0x2   :  { %s15_s10 = sshll.u32 %s115_s9, 4  ;;  %p68_p0 = scmp.ne.s32.totalorder %s160_s0, %s67_s13  ;;  %s16_s10 = int_to_ptr.vmem [resolvable:$true] %s15_s10 }
   0x3   :  { %p71_p1 = scmp.lt.u32.totalorder %s67_s13, %s160_s0 }
   0x5   :  { %p73_p2 = pnand %p71_p1, %p68_p0 }
   0x7   :  { %76 = shalt.err (!%p73_p2)
}
   0x8   :  { %s77_s18 = scalar_lea.vmem %s16_s10, 64  ;;  %p82_p4 = scmp.lt.s32.totalorder %s16_s10, %s16_s10 }
   0x9   :  { %p78_p3 = scmp.ne.s32.totalorder %s16_s10, %s77_s18  ;;  %p83_p5 = scmp.lt.s32.totalorder %s77_s18, %s77_s18 }
   0xb   :  { %p84_p6 = por %p83_p5, %p82_p4 }
   0xd   :  { %p85_p7 = pnand %p84_p6, %p78_p3 }
   0xf   :  { %88 = shalt.err (!%p85_p7)
}
  0x10   :  { %18 = dma.hbm_to_vmem [thread:$0]  %s160_s0, 64, %s16_s10, [#allocation3]  }
  0x11   :  { %111 = dma.done.wait [#allocation3], 64  }
  0x12   :  { %112 = vsyncadd [#allocation3], 4294967232  ;;  %v27_v0 = vlaneseq  ;;  %v116_v1 = vmov 1983009808   ;;  %v25_v7 = vld [vmem:[%s161_s1] sm:$0x3] }
  0x13   :  { %v37_v2 = vunpack.c.l.s4 %v116_v1  ;;  %vm45_vm0 = vcmask 1041408   ;;  %vm46_vm1 = vcmask 257026   ;;  %v24_v12 = vld [vmem:[#allocation2] sm:$0xf]  ;;  %s117_s0 = smov [#allocation5]  }
  0x14   :  { %v28_v3 = vshrl.u32 %v27_v0, 7  ;;  %s55_s23 = sshll.u32 %s117_s0, 4  ;;  %vm47_vm2 = vmor %vm46_vm1, %vm45_vm0  ;;  %s56_s23 = int_to_ptr.vmem [resolvable:$true] %s55_s23 }
  0x15   :  { %v38_v6 = vunpack.c.0.s8 %v37_v2  ;;  %s89_s24 = scalar_lea.vmem %s56_s23, 64  ;;  %p94_p9 = scmp.lt.s32.totalorder %s56_s23, %s56_s23 }
  0x16   :  { %v29_v4 = vsub.s32 0, %v28_v3  ;;  %v33_v5 = vsub.s32 1, %v28_v3  ;;  %p90_p8 = scmp.ne.s32.totalorder %s56_s23, %s89_s24  ;;  %p95_p10 = scmp.lt.s32.totalorder %s89_s24, %s89_s24 }
  0x17   :  { %v41_v10 = vsub.s32 %v38_v6, %v28_v3 }
  0x18   :  { %v30_v8 = vrot.slane %v25_v7, %v29_v4  ;;  %v34_v9 = vrot.slane %v25_v7, %v33_v5  ;;  %p96_p11 = por %p95_p10, %p94_p9 }
  0x1a   :  { %v35_v11 = vcombine.low %v30_v8, %v34_v9  ;;  %p97_p12 = pnand %p96_p11, %p90_p8 }
  0x1c   :  { %v42_v13 = vrot.slane %v35_v11, %v41_v10 }
  0x1e   :  { %v44_v14 = vadd.f32 %v42_v13, %v24_v12 }
  0x20   :  { %48 = vst.msk [vmem:[#allocation5] sm:$0xf] %vm47_vm2, %v44_v14 }
  0x21   :  { %100 = shalt.err (!%p97_p12)
}
  0x22   :  { %s101_s26 = scalar_lea.hbm %s162_s2, 64 }
  0x23   :  { %p102_p13 = scmp.ne.s32.totalorder %s162_s2, %s101_s26  ;;  %p105_p0 = scmp.lt.u32.totalorder %s101_s26, %s162_s2 }
  0x25   :  { %p107_p1 = pnand %p105_p0, %p102_p13 }
  0x27   :  { %110 = shalt.err (!%p107_p1)
}
  0x28   :  { %58 = dma.vmem_to_hbm [thread:$0]  %s56_s23, 64, %s162_s2, [#allocation4]  }
  0x29   :  { %113 = dma.done.wait [#allocation4], 64  }
  0x2a   :  { %114 = vsyncadd [#allocation4], 4294967232 }
  0x2b   :  { %62 = vsyncpa [#allocation3], 1 }
  0x2c   :  { %63 = vsyncpa [#allocation4], 1 }

</bundles_post_ra>
